<compile_context>
chip_gen: v7x
topology: tpu7x:2x2x1
jax: 0.10.0
libtpu: 0.0.40
codegen_flags: <defaults>
</compile_context>

<pallas_src>
from functools import partial

import numpy as np
import jax
import jax.numpy as jnp
from jax.experimental import pallas as pl
from jax.experimental.pallas import tpu as pltpu

LANE = 128            # edges per lane-row
MAX_TILE_ROWS = 512   # sublane rows per grid step (65536 edges)
MIN_ROWS = 32         # min padded rows (int8 labels want sublane blocks % 32)


def _next_pow2(x):
    x = int(x)
    return 1 if x <= 1 else 1 << (x - 1).bit_length()


# --------------------------------------------------------------------------
# Pallas kernel
#   grid = (niter, R // TR)     ("parallel", "arbitrary")
#   pred_ref : (1, 2, TR, 128) f32 -- class-0 / class-1 logits, edges lane-dense
#   lab_ref  : (1, TR, 128)    i8  -- labels in {0,1}, -1 == padding
#   loss_ref : (1, 8, 128)     f32 -- per-iteration partial CE sums
#   acc_ref  : (1, 8, 128)     f32 -- per-iteration partial correct counts
# Output blocks are resident across the edge (reduction) axis; every step is
# pure VPU/EUP work plus a (TR,128)->(8,128) vreg fold, so the accumulator
# load/store traffic is fixed regardless of tile size.
# --------------------------------------------------------------------------
def _ce_acc_kernel(pred_ref, lab_ref, loss_ref, acc_ref):
    r = pl.program_id(1)

    @pl.when(r == 0)
    def _():
        loss_ref[...] = jnp.zeros_like(loss_ref)
        acc_ref[...] = jnp.zeros_like(acc_ref)

    p0 = pred_ref[0, 0, :, :]                       # (TR, 128) f32
    p1 = pred_ref[0, 1, :, :]                       # (TR, 128) f32
    lab = lab_ref[0, :, :].astype(jnp.int32)        # (TR, 128), -1 == pad
    valid = lab >= 0

    # Numerically stable 2-class CE via softplus of the margin:
    #   CE = softplus(p_other - p_true) = max(z, 0) + log(1 + exp(-|z|))
    # (1 exp + 1 log per edge; log argument is in (1, 2] so plain log loses
    #  <1 ulp vs log1p and is kept for guaranteed lowering)
    z = jnp.where(lab == 1, p0 - p1, p1 - p0)
    ce = jnp.maximum(z, 0.0) + jnp.log(1.0 + jnp.exp(-jnp.abs(z)))
    ce = jnp.where(valid, ce, 0.0)

    # argmax over 2 classes; exact ties -> class 0 (np.argmax first-max rule)
    arg = (p1 > p0).astype(jnp.int32)
    correct = jnp.where(valid & (arg == lab), 1.0, 0.0)

    # Fold (TR,128) -> (8,128): pure vreg-to-vreg adds, no cross-lane traffic.
    tr = ce.shape[0]
    loss_ref[0, :, :] += ce.reshape(tr // 8, 8, LANE).sum(axis=0)
    acc_ref[0, :, :] += correct.reshape(tr // 8, 8, LANE).sum(axis=0)


# --------------------------------------------------------------------------
# Jitted, shape-bucketed pipeline: pack + kernel + final reductions.
# --------------------------------------------------------------------------
@partial(jax.jit, static_argnames=('tr',))
def _edge_loss_acc(pred_slabs, lab, w_loss, w_acc, *, tr):
    """pred_slabs: tuple of n equally-shaped (E_pad, 2) f32 arrays (zero-padded).
    lab: (n, R, 128) int8, -1 == padding. w_loss / w_acc: (n,) f32 per-iteration
    weights (0 for dummy iterations). Returns (total_loss, total_acc)."""
    n = lab.shape[0]
    r_rows = lab.shape[1]

    # Single fused packing pass: stack + one (n,E,2)->(n,2,E) transpose.
    pred = jnp.stack(pred_slabs)                                   # (n, E_pad, 2)
    pred = jnp.transpose(pred, (0, 2, 1)).reshape(n, 2, r_rows, LANE)

    loss_part, acc_part = pl.pallas_call(
        _ce_acc_kernel,
        out_shape=(jax.ShapeDtypeStruct((n, 8, LANE), jnp.float32),
                   jax.ShapeDtypeStruct((n, 8, LANE), jnp.float32)),
        grid_spec=pltpu.PrefetchScalarGridSpec(
            num_scalar_prefetch=0,
            grid=(n, r_rows // tr),
            in_specs=[pl.BlockSpec((1, 2, tr, LANE), lambda j, r: (j, 0, r, 0)),
                      pl.BlockSpec((1, tr, LANE), lambda j, r: (j, r, 0))],
            out_specs=(pl.BlockSpec((1, 8, LANE), lambda j, r: (j, 0, 0)),
                       pl.BlockSpec((1, 8, LANE), lambda j, r: (j, 0, 0)))),
        compiler_params=pltpu.CompilerParams(
            # iteration axis is independent; edge axis is the reduction (last).
            # TODO(synk): explicit CORE_PARALLEL split of the edge axis for v7x.
            dimension_semantics=("parallel", "arbitrary"),
            vmem_limit_bytes=32 * 1024 * 1024),
    )(pred, lab)

    loss_sum = jnp.sum(loss_part, axis=(1, 2))                     # (n,)
    acc_cnt = jnp.sum(acc_part, axis=(1, 2))                       # (n,)
    return jnp.sum(loss_sum * w_loss), jnp.sum(acc_cnt * w_acc)


def batched_ce_acc(preds, labs, reduction='mean'):
    """preds: list of (E_j, 2) device arrays; labs: list of (E_j,) int labels.
    One pallas_call covers every GNN iteration. Returns (total_loss, total_acc)
    = sum_j CE_j (mean or sum per `reduction`) and sum_j accuracy_j, exactly the
    quantities the torch module accumulates."""
    n = len(preds)
    e_max = max(int(p.shape[0]) for p in preds)

    # Shape bucketing so the jitted pipeline does not recompile per event:
    #   rows  -> power of two >= MIN_ROWS  (one row == 128 edges)
    #   niter -> power of two              (dummy iterations get weight 0)
    r_rows = _next_pow2(max(MIN_ROWS, pl.cdiv(e_max, LANE)))
    e_pad = r_rows * LANE
    tr = min(r_rows, MAX_TILE_ROWS)
    n_pad = _next_pow2(n)

    lab_np = np.full((n_pad, e_pad), -1, np.int8)
    w_loss = np.zeros((n_pad,), np.float32)
    w_acc = np.zeros((n_pad,), np.float32)
    for k, l in enumerate(labs):
        l = np.asarray(l)
        lab_np[k, :l.shape[0]] = l.astype(np.int8)
        w_acc[k] = 1.0 / l.shape[0]
        w_loss[k] = w_acc[k] if reduction == 'mean' else 1.0

    # Per-iteration zero-pad of the device-resident predictions. These are tiny
    # eager ops (bytes ~ E_j); the expensive fused pipeline only ever sees the
    # bucketed (n_pad, E_pad, 2) shapes.
    base = jnp.zeros((e_pad, 2), jnp.float32)
    slabs = [base.at[:int(p.shape[0]), :].set(jnp.asarray(p, jnp.float32))
             for p in preds]
    slabs += [base] * (n_pad - n)

    return _edge_loss_acc(tuple(slabs),
                          jnp.asarray(lab_np.reshape(n_pad, r_rows, LANE)),
                          jnp.asarray(w_loss), jnp.asarray(w_acc), tr=tr)


# --------------------------------------------------------------------------
# Host-side helpers (NumPy glue, mirrors the mlreco utilities the module uses)
# cluster_label columns: [x, y, z, batchid, value, id, groupid, shape]
# --------------------------------------------------------------------------
def reform_clusters(cluster_label, clust_ids, batch_ids, batch_col=3):
    return [np.where((cluster_label[:, batch_col] == batch_ids[k]) &
                     (cluster_label[:, 5] == clust_ids[k]))[0]
            for k in range(len(clust_ids))]


def get_cluster_group(cluster_label, clusts):
    groups = []
    for c in clusts:
        v, cnt = np.unique(cluster_label[c, 6], return_counts=True)
        groups.append(v[np.argmax(cnt)])
    return np.array(groups)


def get_fragment_edges(graph, clust_ids, batch_ids):
    # graph rows: [batch_id, clust_id_1, clust_id_2] -> cluster-index pairs
    true_edges = []
    for b, c1, c2 in graph:
        n1 = np.where((batch_ids == b) & (clust_ids == c1))[0]
        n2 = np.where((batch_ids == b) & (clust_ids == c2))[0]
        if len(n1) and len(n2):
            true_edges.append([n1[0], n2[0]])
    return np.array(true_edges, dtype=np.int64).reshape(-1, 2)


def edge_assignment(edge_index, batch_ids, group_ids):
    return np.array(
        [int(batch_ids[i] == batch_ids[j] and group_ids[i] == group_ids[j])
         for i, j in np.asarray(edge_index).T], dtype=np.int64)


def edge_assignment_from_graph(edge_index, true_edge_index):
    true = set(map(tuple, np.asarray(true_edge_index).tolist()))
    return np.array([int(((i, j) in true) or ((j, i) in true))
                     for i, j in np.asarray(edge_index).T], dtype=np.int64)


# --------------------------------------------------------------------------
# The loss "module"
# --------------------------------------------------------------------------
class IterEdgeChannelLoss:
    def __init__(self, cfg):
        self.model_config = cfg
        self.loss = cfg.get('loss', 'CE')
        self.reduction = cfg.get('reduction', 'mean')
        self.balance_classes = cfg.get('balance_classes', False)
        self.target_photons = cfg.get('target_photons', False)
        self.batch_col = cfg.get('batch_col', 3)
        if self.loss != 'CE':
            # TODO(synk): MultiMarginLoss ('MM') branch not implemented in Pallas.
            raise NotImplementedError('Loss not implemented in Pallas port: '
                                      + str(self.loss))
        if self.balance_classes:
            # TODO(synk): balance_classes needs per-class partial CE sums in the
            # kernel; refuse rather than silently return unweighted CE.
            raise NotImplementedError(
                'balance_classes=True is not supported by the Pallas port')

    def forward(self, out, clusters, graph):
        total_loss, total_acc = 0.0, 0.0
        total_iter = 0
        ngpus = len(clusters)
        out['group_ids'] = []
        for i in range(ngpus):
            if not len(out['clust_ids'][i]):
                ngpus = max(1, ngpus - 1)
                continue
            cluster_label = np.asarray(clusters[i])
            clust_ids = np.asarray(out['clust_ids'][i])
            batch_ids = np.asarray(out['batch_ids'][i])
            clusts = reform_clusters(cluster_label, clust_ids, batch_ids,
                                     batch_col=self.batch_col)
            niter = out['counter'][i][0]
            total_iter += niter
            group_ids = get_cluster_group(cluster_label, clusts)
            out['group_ids'].append(group_ids)
            g = np.asarray(graph[i])
            true_edge_index = get_fragment_edges(g, clust_ids, batch_ids)

            preds, labs = [], []
            for j in range(niter):
                edge_pred = out['edge_pred'][i][j]      # device (E, 2)
                edge_index = out['edge_index'][i][j]    # np     (2, E)
                if not self.target_photons:
                    edge_assn = edge_assignment(edge_index, batch_ids, group_ids)
                else:
                    edge_assn = edge_assignment_from_graph(edge_index,
                                                           true_edge_index)
                edge_assn = np.asarray(edge_assn).reshape(-1)
                if edge_assn.shape[0] == 0:
                    # guard: the original torch code would divide by zero here
                    continue
                preds.append(edge_pred)
                labs.append(edge_assn.astype(np.int32))

            if not preds:
                continue
            # single pallas_call covering all GNN iterations of this event
            loss_i, acc_i = batched_ce_acc(preds, labs, reduction=self.reduction)
            total_loss = total_loss + loss_i
            total_acc = total_acc + acc_i

        return {'accuracy': total_acc / max(1, total_iter),
                'loss': total_loss / ngpus,
                'n_iter': total_iter}


# --------------------------------------------------------------------------
# NumPy reference (verification only)
# --------------------------------------------------------------------------
def _ref_ce_acc(pred, lab, reduction='mean'):
    pred = np.asarray(pred, np.float64)
    lab = np.asarray(lab, np.int64)
    m = pred.max(axis=1, keepdims=True)
    lse = m[:, 0] + np.log(np.exp(pred - m).sum(axis=1))
    ce = lse - pred[np.arange(len(lab)), lab]
    loss = ce.mean() if reduction == 'mean' else ce.sum()
    acc = float((pred.argmax(axis=1) == lab).mean())
    return float(loss), acc


if __name__ == "__main__":
    key = jax.random.PRNGKey(0)

    # --- synthetic clusters: 2 batches x 4 clusters, 8 voxels each (N=64) ---
    n_batches, n_clust_per_batch, vox_per_clust = 2, 4, 8
    rows = []
    clust_ids, batch_ids = [], []
    for b in range(n_batches):
        for c in range(n_clust_per_batch):
            g = c // 2  # group id: clusters {0,1}->group 0, {2,3}->group 1
            key, sub = jax.random.split(key)
            xyz = np.asarray(jax.random.uniform(sub, (vox_per_clust, 3))) * 16.0
            for v in range(vox_per_clust):
                # [x, y, z, batchid, value, id, groupid, shape]
                rows.append([xyz[v, 0], xyz[v, 1], xyz[v, 2],
                             float(b), 1.0, float(c), float(g), 0.0])
            clust_ids.append(c)
            batch_ids.append(b)
    cluster_label = np.array(rows, dtype=np.float64)          # (64, 8)
    clust_ids = np.array(clust_ids, dtype=np.int64)           # (8,)
    batch_ids = np.array(batch_ids, dtype=np.int64)           # (8,)

    # true group-level edges: [batch, clust1, clust2]
    graph = np.array([[0, 0, 1], [0, 2, 3], [1, 0, 1], [1, 2, 3]],
                     dtype=np.int64)

    # --- edge index: all intra-batch cluster pairs (one direction), E = 12 ---
    pairs = []
    for b in range(n_batches):
        idx = np.where(batch_ids == b)[0]
        for a in range(len(idx)):
            for c in range(a + 1, len(idx)):
                pairs.append([idx[a], idx[c]])
    edge_index_np = np.array(pairs, dtype=np.int64).T          # (2, 12)
    E = edge_index_np.shape[1]

    # --- 2 GNN iterations of (E, 2) edge predictions ---
    niter = 2
    edge_preds, edge_indices = [], []
    for j in range(niter):
        key, sub = jax.random.split(key)
        edge_preds.append(jax.random.normal(sub, (E, 2), dtype=jnp.float32))
        edge_indices.append(edge_index_np)

    out = {
        'edge_pred': [edge_preds],
        'edge_index': [edge_indices],
        'clust_ids': [clust_ids],
        'batch_ids': [batch_ids],
        'counter': [[niter]],
    }
    clusters = [cluster_label]
    graphs = [graph]

    loss_module = IterEdgeChannelLoss({})
    res = loss_module.forward(out, clusters, graphs)
    loss = float(jax.block_until_ready(res['loss']))
    acc = float(jax.block_until_ready(res['accuracy']))

    # reference check for the full module path (reduction='mean', ngpus=1)
    ref_loss, ref_acc = 0.0, 0.0
    group_ids = out['group_ids'][0]
    for j in range(niter):
        lab = edge_assignment(edge_indices[j], batch_ids, group_ids)
        l, a = _ref_ce_acc(np.asarray(edge_preds[j]), lab, 'mean')
        ref_loss += l
        ref_acc += a
    ref_acc /= niter
    assert np.allclose(loss, ref_loss, rtol=1e-4, atol=1e-5), (loss, ref_loss)
    assert np.allclose(acc, ref_acc, rtol=1e-4, atol=1e-5), (acc, ref_acc)

    # --- stress check: uneven edge counts per iteration, padding + masking,
    #     niter bucketing (3 -> 4) and >1 reduction step along the edge axis ---
    sizes = (70000, 50000, 1000)
    big_preds, big_labs = [], []
    for e in sizes:
        key, k1, k2 = jax.random.split(key, 3)
        big_preds.append(jax.random.normal(k1, (e, 2), dtype=jnp.float32))
        big_labs.append(np.asarray(
            jax.random.bernoulli(k2, 0.5, (e,))).astype(np.int64))
    for red in ('mean', 'sum'):     # both reductions share one compiled pipeline
        bl, ba = batched_ce_acc(big_preds, big_labs, reduction=red)
        bl = float(jax.block_until_ready(bl))
        ba = float(jax.block_until_ready(ba))
        rl = sum(_ref_ce_acc(np.asarray(p), l, red)[0]
                 for p, l in zip(big_preds, big_labs))
        ra = sum(_ref_ce_acc(np.asarray(p), l, red)[1]
                 for p, l in zip(big_preds, big_labs))
        assert np.allclose(bl, rl, rtol=1e-4, atol=1e-3), (red, bl, rl)
        assert np.allclose(ba, ra, rtol=1e-4, atol=1e-5), (red, ba, ra)

    print("KERNEL_OK")
</pallas_src>

<mosaic_0001>
module attributes {stable_mosaic.version = 11 : i64} {
  func.func @_ce_acc_kernel(%arg0: i32, %arg1: i32, %arg2: memref<1x2x32x128xf32, #tpu.memory_space<vmem>>, %arg3: memref<1x32x128xi8, #tpu.memory_space<vmem>>, %arg4: memref<1x8x128xf32, #tpu.memory_space<vmem>>, %arg5: memref<1x8x128xf32, #tpu.memory_space<vmem>>) attributes {dimension_semantics = [#tpu.dimension_semantics<parallel>, #tpu.dimension_semantics<arbitrary>], iteration_bounds = array<i64: 2, 1>, scalar_prefetch = 0 : i64, scratch_operands = 0 : i64, tpu.core_type = #tpu.core_type<tc>, window_params = [{transform_indices = @transform_0, window_bounds = array<i64: 1, 2, 32, 128>}, {transform_indices = @transform_1, window_bounds = array<i64: 1, 32, 128>}, {transform_indices = @transform_2, window_bounds = array<i64: 1, 8, 128>}, {transform_indices = @transform_3, window_bounds = array<i64: 1, 8, 128>}]} {
    %c0_i32 = arith.constant 0 : i32
    %0 = arith.cmpi eq, %arg1, %c0_i32 : i32
    %1 = arith.extui %0 : i1 to i32
    %c0_i32_0 = arith.constant 0 : i32
    %2 = arith.cmpi ne, %1, %c0_i32_0 : i32
    scf.if %2 {
      %cst_30 = arith.constant 0.000000e+00 : f32
      %52 = vector.broadcast %cst_30 : f32 to vector<1x8x128xf32>
      %c0_31 = arith.constant 0 : index
      %c0_32 = arith.constant 0 : index
      %c0_33 = arith.constant 0 : index
      %53 = vector.load %arg4[%c0_31, %c0_32, %c0_33] : memref<1x8x128xf32, #tpu.memory_space<vmem>>, vector<1x8x128xf32>
      tpu.vector_store %arg4[%c0_31, %c0_32, %c0_33], %52 {strides = array<i32>} : memref<1x8x128xf32, #tpu.memory_space<vmem>>, vector<1x8x128xf32>,
      %cst_34 = arith.constant 0.000000e+00 : f32
      %54 = vector.broadcast %cst_34 : f32 to vector<1x8x128xf32>
      %c0_35 = arith.constant 0 : index
      %c0_36 = arith.constant 0 : index
      %c0_37 = arith.constant 0 : index
      %55 = vector.load %arg5[%c0_35, %c0_36, %c0_37] : memref<1x8x128xf32, #tpu.memory_space<vmem>>, vector<1x8x128xf32>
      tpu.vector_store %arg5[%c0_35, %c0_36, %c0_37], %54 {strides = array<i32>} : memref<1x8x128xf32, #tpu.memory_space<vmem>>, vector<1x8x128xf32>,
    } else {
    }
    %c0 = arith.constant 0 : index
    %c0_1 = arith.constant 0 : index
    %c0_2 = arith.constant 0 : index
    %c0_3 = arith.constant 0 : index
    %3 = vector.load %arg2[%c0, %c0_1, %c0_2, %c0_3] : memref<1x2x32x128xf32, #tpu.memory_space<vmem>>, vector<1x1x32x128xf32>
    %4 = vector.shape_cast %3 : vector<1x1x32x128xf32> to vector<32x128xf32>
    %c0_4 = arith.constant 0 : index
    %c1 = arith.constant 1 : index
    %c0_5 = arith.constant 0 : index
    %c0_6 = arith.constant 0 : index
    %5 = vector.load %arg2[%c0_4, %c1, %c0_5, %c0_6] : memref<1x2x32x128xf32, #tpu.memory_space<vmem>>, vector<1x1x32x128xf32>
    %6 = vector.shape_cast %5 : vector<1x1x32x128xf32> to vector<32x128xf32>
    %c0_7 = arith.constant 0 : index
    %c0_8 = arith.constant 0 : index
    %c0_9 = arith.constant 0 : index
    %7 = vector.load %arg3[%c0_7, %c0_8, %c0_9] : memref<1x32x128xi8, #tpu.memory_space<vmem>>, vector<1x32x128xi8>
    %8 = vector.shape_cast %7 : vector<1x32x128xi8> to vector<32x128xi8>
    %9 = arith.extsi %8 : vector<32x128xi8> to vector<32x128xi32>
    %c0_i32_10 = arith.constant 0 : i32
    %10 = vector.broadcast %c0_i32_10 : i32 to vector<32x128xi32>
    %11 = arith.cmpi sge, %9, %10 : vector<32x128xi32>
    %c1_i32 = arith.constant 1 : i32
    %12 = vector.broadcast %c1_i32 : i32 to vector<32x128xi32>
    %13 = arith.cmpi eq, %9, %12 : vector<32x128xi32>
    %14 = arith.subf %4, %6 : vector<32x128xf32>
    %15 = arith.subf %6, %4 : vector<32x128xf32>
    %16 = arith.select %13, %14, %15 : vector<32x128xi1>, vector<32x128xf32>
    %cst = arith.constant 0.000000e+00 : f32
    %17 = vector.broadcast %cst : f32 to vector<32x128xf32>
    %18 = arith.maximumf %16, %17 : vector<32x128xf32>
    %19 = math.absf %16 : vector<32x128xf32>
    %cst_11 = arith.constant 0.000000e+00 : f32
    %20 = vector.broadcast %cst_11 : f32 to vector<32x128xf32>
    %21 = arith.subf %20, %19 : vector<32x128xf32>
    %22 = math.exp %21 : vector<32x128xf32>
    %cst_12 = arith.constant 1.000000e+00 : f32
    %23 = vector.broadcast %cst_12 : f32 to vector<32x128xf32>
    %24 = arith.addf %23, %22 : vector<32x128xf32>
    %25 = math.log %24 : vector<32x128xf32>
    %26 = arith.addf %18, %25 : vector<32x128xf32>
    %cst_13 = arith.constant 0.000000e+00 : f32
    %27 = vector.broadcast %cst_13 : f32 to vector<32x128xf32>
    %28 = arith.select %11, %26, %27 : vector<32x128xi1>, vector<32x128xf32>
    %29 = arith.cmpf ogt, %6, %4 : vector<32x128xf32>
    %30 = arith.extui %29 : vector<32x128xi1> to vector<32x128xi32>
    %31 = arith.cmpi eq, %30, %9 : vector<32x128xi32>
    %32 = arith.andi %11, %31 : vector<32x128xi1>
    %cst_14 = arith.constant 1.000000e+00 : f32
    %cst_15 = arith.constant 0.000000e+00 : f32
    %33 = vector.broadcast %cst_14 : f32 to vector<32x128xf32>
    %34 = vector.broadcast %cst_15 : f32 to vector<32x128xf32>
    %35 = arith.select %32, %33, %34 : vector<32x128xi1>, vector<32x128xf32>
    %c0_16 = arith.constant 0 : index
    %c0_17 = arith.constant 0 : index
    %c0_18 = arith.constant 0 : index
    %36 = vector.load %arg4[%c0_16, %c0_17, %c0_18] : memref<1x8x128xf32, #tpu.memory_space<vmem>>, vector<1x8x128xf32>
    %37 = vector.shape_cast %36 : vector<1x8x128xf32> to vector<8x128xf32>
    %38 = vector.shape_cast %28 : vector<32x128xf32> to vector<4x8x128xf32>
    %cst_19 = arith.constant dense<0.000000e+00> : vector<8x128xf32>
    %39 = vector.multi_reduction <add>, %38, %cst_19 [0] : vector<4x8x128xf32> to vector<8x128xf32>
    %40 = arith.addf %37, %39 : vector<8x128xf32>
    %c0_20 = arith.constant 0 : index
    %c0_21 = arith.constant 0 : index
    %c0_22 = arith.constant 0 : index
    %41 = vector.load %arg4[%c0_20, %c0_21, %c0_22] : memref<1x8x128xf32, #tpu.memory_space<vmem>>, vector<1x8x128xf32>
    %42 = vector.shape_cast %41 : vector<1x8x128xf32> to vector<8x128xf32>
    %43 = vector.shape_cast %40 : vector<8x128xf32> to vector<1x8x128xf32>
    tpu.vector_store %arg4[%c0_20, %c0_21, %c0_22], %43 {strides = array<i32>} : memref<1x8x128xf32, #tpu.memory_space<vmem>>, vector<1x8x128xf32>,
    %c0_23 = arith.constant 0 : index
    %c0_24 = arith.constant 0 : index
    %c0_25 = arith.constant 0 : index
    %44 = vector.load %arg5[%c0_23, %c0_24, %c0_25] : memref<1x8x128xf32, #tpu.memory_space<vmem>>, vector<1x8x128xf32>
    %45 = vector.shape_cast %44 : vector<1x8x128xf32> to vector<8x128xf32>
    %46 = vector.shape_cast %35 : vector<32x128xf32> to vector<4x8x128xf32>
    %cst_26 = arith.constant dense<0.000000e+00> : vector<8x128xf32>
    %47 = vector.multi_reduction <add>, %46, %cst_26 [0] : vector<4x8x128xf32> to vector<8x128xf32>
    %48 = arith.addf %45, %47 : vector<8x128xf32>
    %c0_27 = arith.constant 0 : index
    %c0_28 = arith.constant 0 : index
    %c0_29 = arith.constant 0 : index
    %49 = vector.load %arg5[%c0_27, %c0_28, %c0_29] : memref<1x8x128xf32, #tpu.memory_space<vmem>>, vector<1x8x128xf32>
    %50 = vector.shape_cast %49 : vector<1x8x128xf32> to vector<8x128xf32>
    %51 = vector.shape_cast %48 : vector<8x128xf32> to vector<1x8x128xf32>
    tpu.vector_store %arg5[%c0_27, %c0_28, %c0_29], %51 {strides = array<i32>} : memref<1x8x128xf32, #tpu.memory_space<vmem>>, vector<1x8x128xf32>,
    return
  }
  func.func @transform_0(%arg0: i32, %arg1: i32) -> (i32, i32, i32, i32) {
    %c0_i32 = arith.constant 0 : i32
    %c0_i32_0 = arith.constant 0 : i32
    %c0_i32_1 = arith.constant 0 : i32
    return %arg0, %c0_i32, %arg1, %c0_i32_0 : i32, i32, i32, i32
  }
  func.func @transform_1(%arg0: i32, %arg1: i32) -> (i32, i32, i32) {
    %c0_i32 = arith.constant 0 : i32
    %c0_i32_0 = arith.constant 0 : i32
    return %arg0, %arg1, %c0_i32 : i32, i32, i32
  }
  func.func @transform_2(%arg0: i32, %arg1: i32) -> (i32, i32, i32) {
    %c0_i32 = arith.constant 0 : i32
    %c0_i32_0 = arith.constant 0 : i32
    %c0_i32_1 = arith.constant 0 : i32
    return %arg0, %c0_i32, %c0_i32_0 : i32, i32, i32
  }
  func.func @transform_3(%arg0: i32, %arg1: i32) -> (i32, i32, i32) {
    %c0_i32 = arith.constant 0 : i32
    %c0_i32_0 = arith.constant 0 : i32
    %c0_i32_1 = arith.constant 0 : i32
    return %arg0, %c0_i32, %c0_i32_0 : i32, i32, i32
  }
}

</mosaic_0001>

<bundles_post_ra>
// kernel: _edge_loss_acc.1
= control target key start
LH: loop header
LB: loop body
LE: loop exit
PB: predicated region body
PF: predicated region fallthrough
CT: control target
= control target key end

     0   :  { %s566_s12 = smov 0   ;;  %s568_s13 = smov 0   ;;  %s664_s0 = inlined_call_operand.vmem [shape: f32[2,2,32,128], index: 0, kind: input, shape index: {}]   ;;  %s665_s1 = inlined_call_operand.vmem [shape: s8[2,32,128], index: 1, kind: input, shape index: {}]   ;;  %s666_s2 = inlined_call_operand.vmem [shape: f32[2,8,128], index: 2, kind: output, shape index: {0}]   ;;  %s667_s3 = inlined_call_operand.vmem [shape: f32[2,8,128], index: 3, kind: output, shape index: {1}]  }
   0x1   :  { %s570_s14 = smov 0  }
   0x2 LB: > { %s26_s15 = sadd.s32 1, %s538_s13  ;;  %p465_p0 = scmp.ge.s32.totalorder %s542_s14, 1  ;;  %s542_s14 = sphi %s570_s14, %s14_s14   ;;  %s538_s13 = sphi %s568_s13, %s669_s13   ;;  %s534_s12 = sphi %s566_s12, %s668_s12  }
   0x3   : > { %p28_p1 = scmp.ge.s32.totalorder %s26_s15, 2  ;;  %p173_p2 = scmp.lt.s32.totalorder %s542_s14, 3 }
   0x5   : > { %s671_s15 = smov (%p28_p1, %s26_s15), 0  ;;  %p174_p3 = pnand %p465_p0, %p173_p2 }
   0x6   : > { %p212_p4 = scmp.lt.s32.totalorder (!%p174_p3), %s534_s12, 1  ;;  %v544_v31 = vmov (!%p174_p3), 0   ;;  %v545_v42 = vmov (!%p174_p3), 0.0  }
   0x7   : > { %177 = sbr.rel (%p174_p3) target bundleno = 67 (0x43), region = 28 }
   0xe   : > { %s673_s12 = smov (!%p212_p4, %s534_s12), 1 }
   0xf   : > { %s477_s16 = sshll.u32 %s673_s12, 6  ;;  %s584_s17 = sshll.u32 %s673_s12, 3 }
  0x10   : > { %s219_s20 = scalar_lea.vmem %s664_s0, %s477_s16  ;;  %s227_s23 = scalar_lea.vmem %s665_s1, %s584_s17 }
  0x11   : > { %v251_v0 = vld [vmem:[%s227_s23] sm:$0xff]  ;;  %v243_v2 = vld [vmem:[%s219_s20 + $0x8] sm:$0xff]  ;;  %v244_v7 = vld [vmem:[%s219_s20 + $0x10] sm:$0xff]  ;;  %s235_s26 = scalar_lea.vmem %s667_s3, %s584_s17  ;;  %s231_s29 = scalar_lea.vmem %s666_s2, %s584_s17 }
  0x12   : > { %v242_v1 = vld [vmem:[%s219_s20] sm:$0xff]  ;;  %v593_v3 = vunpack.c.0.s8 %v251_v0  ;;  %v595_v4 = vunpack.c.1.s8 %v251_v0  ;;  %v597_v5 = vunpack.c.2.s8 %v251_v0  ;;  %v599_v6 = vunpack.c.3.s8 %v251_v0  ;;  %v245_v8 = vld [vmem:[%s219_s20 + $0x18] sm:$0xff]  ;;  %v472_v10 = vld [vmem:[%s219_s20 + $0x28] sm:$0xff] }
  0x13   : > { %v471_v9 = vld [vmem:[%s219_s20 + $0x20] sm:$0xff]  ;;  %v473_v11 = vld [vmem:[%s219_s20 + $0x30] sm:$0xff]  ;;  %v474_v12 = vld [vmem:[%s219_s20 + $0x38] sm:$0xff]  ;;  %v265_v15 = vsub.f32 %v243_v2, %v472_v10  ;;  %v269_v18 = vsub.f32 %v472_v10, %v243_v2  ;;  %vm317_vm7 = vcmp.gt.f32.partialorder %v472_v10, %v243_v2 }
  0x14   : > { %v264_v13 = vsub.f32 %v242_v1, %v471_v9  ;;  %v268_v14 = vsub.f32 %v471_v9, %v242_v1  ;;  %vm260_vm0 = vcmp.eq.s32.totalorder %v593_v3, 1  ;;  %vm261_vm1 = vcmp.eq.s32.totalorder %v595_v4, 1 }
  0x15   : > { %vm262_vm2 = vcmp.eq.s32.totalorder %v597_v5, 1  ;;  %vm263_vm3 = vcmp.eq.s32.totalorder %v599_v6, 1  ;;  %vm316_vm4 = vcmp.gt.f32.partialorder %v471_v9, %v242_v1  ;;  %v266_v16 = vsub.f32 %v244_v7, %v473_v11 }
  0x16   : > { %v267_v17 = vsub.f32 %v245_v8, %v474_v12  ;;  %vm256_vm5 = vcmp.ge.s32.totalorder %v593_v3, 0  ;;  %v270_v19 = vsub.f32 %v473_v11, %v244_v7  ;;  %v271_v20 = vsub.f32 %v474_v12, %v245_v8 }
  0x17   : > { %v606_v21 = vsel %vm260_vm0, %v264_v13, %v268_v14  ;;  %vm257_vm6 = vcmp.ge.s32.totalorder %v595_v4, 0  ;;  %v609_v22 = vsel %vm261_vm1, %v265_v15, %v269_v18  ;;  %vm318_vm8 = vcmp.gt.f32.partialorder %v473_v11, %v244_v7 }
  0x18   : > { %v280_v23 = vand.u32 2147483647, %v606_v21  ;;  %v612_v24 = vsel %vm262_vm2, %v266_v16, %v270_v19  ;;  %v614_v25 = vsel %vm263_vm3, %v267_v17, %v271_v20  ;;  %v281_v26 = vand.u32 2147483647, %v609_v22 }
  0x19   : > { %vm258_vm9 = vcmp.ge.s32.totalorder %v597_v5, 0  ;;  %vm259_vm10 = vcmp.ge.s32.totalorder %v599_v6, 0  ;;  %v282_v27 = vand.u32 2147483647, %v612_v24  ;;  %v283_v28 = vand.u32 2147483647, %v614_v25 }
  0x1a   : > { %v284_v29 = vsub.f32 0.0, %v280_v23  ;;  %v285_v30 = vsub.f32 0.0, %v281_v26  ;;  %vm319_vm11 = vcmp.gt.f32.partialorder %v474_v12, %v245_v8  ;;  %v320_v32 = vsel %vm316_vm4, 1, %v544_v31 }
  0x1b   : > { %v286_v33 = vsub.f32 0.0, %v282_v27  ;;  %v287_v34 = vsub.f32 0.0, %v283_v28  ;;  %v321_v35 = vsel %vm317_vm7, 1, %v544_v31  ;;  %v322_v36 = vsel %vm318_vm8, 1, %v544_v31 }
  0x1c   : > { %v288_v37 = vmul.f32 1.442695, %v284_v29  ;;  %v290_v38 = vmul.f32 1.442695, %v285_v30  ;;  %v323_v39 = vsel %vm319_vm11, 1, %v544_v31  ;;  %vm324_vm12 = vcmp.eq.s32.totalorder %v320_v32, %v593_v3 }
  0x1d   : > { %v292_v40 = vmul.f32 1.442695, %v286_v33  ;;  %v294_v41 = vmul.f32 1.442695, %v287_v34  ;;  %vm325_vm13 = vcmp.eq.s32.totalorder %v321_v35, %v595_v4  ;;  %vm326_vm14 = vcmp.eq.s32.totalorder %v322_v36, %v597_v5  ;;  %vm328_vm15 = vmand %vm256_vm5, %vm324_vm12 }
  0x1e   : > { %504 = vpow2.f32 %v288_v37  ;;  %vm327_vm0 = vcmp.eq.s32.totalorder %v323_v39, %v599_v6  ;;  %vm329_vm1 = vmand %vm257_vm6, %vm325_vm13  ;;  %v332_v43 = vsel %vm328_vm15, 1.0, %v545_v42  ;;  %v276_v58 = vmax.f32 %v606_v21, 0.0 }
  0x1f   : > { %506 = vpow2.f32 %v290_v38  ;;  %vm330_vm2 = vmand %vm258_vm9, %vm326_vm14  ;;  %v333_v44 = vsel %vm329_vm1, 1.0, %v545_v42  ;;  %v277_v60 = vmax.f32 %v609_v22, 0.0  ;;  %v278_v62 = vmax.f32 %v612_v24, 0.0 }
  0x20   : > { %508 = vpow2.f32 %v292_v40  ;;  %vm331_vm3 = vmand %vm259_vm10, %vm327_vm0  ;;  %v334_v45 = vsel %vm330_vm2, 1.0, %v545_v42  ;;  %v343_v46 = vadd.f32 %v333_v44, %v332_v43  ;;  %v279_v1 = vmax.f32 %v614_v25, 0.0 }
  0x21   : > { %510 = vpow2.f32 %v294_v41  ;;  %v335_v47 = vsel %vm331_vm3, 1.0, %v545_v42 }
  0x22   : > { %v344_v48 = vadd.f32 %v343_v46, %v334_v45 }
  0x24   : > { %v345_v49 = vadd.f32 %v344_v48, %v335_v47 }
  0x26   : > { %347 = vst [vmem:[%s235_s26] sm:$0xff] %v345_v49 }
  0x28   : > { %v505_v50 = vpop.eup %504 }
  0x29   : > { %v507_v51 = vpop.eup %506  ;;  %v296_v52 = vadd.f32 1.0, %v505_v50 }
  0x2a   : > { %v509_v53 = vpop.eup %508  ;;  %v297_v54 = vadd.f32 1.0, %v507_v51 }
  0x2b   : > { %v511_v55 = vpop.eup %510  ;;  %v298_v56 = vadd.f32 1.0, %v509_v53  ;;  %512 = vlog2.f32 %v296_v52 }
  0x2c   : > { %v299_v57 = vadd.f32 1.0, %v511_v55  ;;  %514 = vlog2.f32 %v297_v54 }
  0x2d   : > { %516 = vlog2.f32 %v298_v56 }
  0x2e   : > { %518 = vlog2.f32 %v299_v57 }
  0x35   : > { %v513_v59 = vpop.eup %512 }
  0x36   : > { %v515_v61 = vpop.eup %514  ;;  %v301_v63 = vmul.f32 0.6931472, %v513_v59 }
  0x37   : > { %v517_v0 = vpop.eup %516  ;;  %v303_v2 = vmul.f32 0.6931472, %v515_v61 }
  0x38   : > { %v519_v7 = vpop.eup %518  ;;  %v305_v8 = vmul.f32 0.6931472, %v517_v0  ;;  %v308_v9 = vadd.f32 %v301_v63, %v276_v58 }
  0x39   : > { %v307_v10 = vmul.f32 0.6931472, %v519_v7  ;;  %v309_v11 = vadd.f32 %v303_v2, %v277_v60 }
  0x3a   : > { %v310_v12 = vadd.f32 %v305_v8, %v278_v62  ;;  %v312_v13 = vsel %vm256_vm5, %v308_v9, 0.0 }
  0x3b   : > { %v311_v14 = vadd.f32 %v307_v10, %v279_v1  ;;  %v313_v15 = vsel %vm257_vm6, %v309_v11, 0.0 }
  0x3c   : > { %v314_v16 = vsel %vm258_vm9, %v310_v12, 0.0  ;;  %v337_v17 = vadd.f32 %v313_v15, %v312_v13 }
  0x3d   : > { %v315_v18 = vsel %vm259_vm10, %v311_v14, 0.0 }
  0x3e   : > { %v338_v19 = vadd.f32 %v337_v17, %v314_v16 }
  0x40   : > { %v339_v20 = vadd.f32 %v338_v19, %v315_v18 }
  0x42   : > { %341 = vst [vmem:[%s231_s29] sm:$0xff] %v339_v20 }
  0x43 PF: > { %s14_s14 = sadd.s32 1, %s542_s14   ;;  %s668_s12 = smov %s538_s13 }
  0x44   : > { %p11_p5 = scmp.ge.s32.totalorder %s14_s14, 4   ;;  %s669_s13 = smov %s671_s15 }
  0x46   :  { %13 = sbr.rel (!%p11_p5) target bundleno = 2 (0x2), region = 78 }

</bundles_post_ra>
